<compile_context>
chip_gen: v7x
topology: tpu7x:2x2x1
jax: 0.10.0
libtpu: 0.0.40
codegen_flags: <defaults>
</compile_context>

<pallas_src>
import jax
import jax.numpy as jnp
from jax.experimental import pallas as pl
from jax.experimental.pallas import tpu as pltpu


def _node_proj_kernel(w1a_ref, w1b_ref, b1_ref, ht_ref, p_ref):
    """Per-node projections, transposed + fused layout.

    w1a_ref, w1b_ref : [H, H]   (W1[:, :H], W1[:, H:])
    b1_ref           : [H, 1]
    ht_ref           : [H, N]   (h^T)
    p_ref            : [H, 2N]  output: [ (h @ W1a^T)^T + b1 | (h @ W1b^T)^T ]
    """
    ht = ht_ref[...]
    pa = jnp.dot(w1a_ref[...], ht, preferred_element_type=jnp.float32) + b1_ref[...]
    pb = jnp.dot(w1b_ref[...], ht, preferred_element_type=jnp.float32)
    p_ref[...] = jnp.concatenate([pa, pb], axis=1)


def _edge_score_kernel(src_ref, dst_ref, p_ref, w2_ref, b2_ref, o_ref):
    """Score one lane-dense tile of edges.

    src_ref : [1, TE]  int32 source node id per edge          (values in [0, N))
    dst_ref : [1, TE]  int32 destination node id + N per edge (values in [N, 2N))
    p_ref   : [H, 2N]  VMEM-resident fused projection table (b1 folded into src half)
    w2_ref  : [H, 1]   second-layer weights as a column
    b2_ref  : [1, 1]
    o_ref   : [1, TE]  scores (lane-dense output block)
    """
    two_n = p_ref.shape[1]
    tile_e = src_ref.shape[1]

    # "Two-hot" gather+sum of both endpoint projections in a single MXU matmul.
    # src ids are in [0, N) and shifted dst ids in [N, 2N), so the two hits per
    # column are always distinct.
    # TODO(synk): for graphs whose projection table does not fit VMEM, replace
    # the two-hot matmul gather with a DMA gather over HBM-resident projections.
    ids = jax.lax.broadcasted_iota(jnp.int32, (two_n, tile_e), 0)
    hit = (ids == src_ref[...]) | (ids == dst_ref[...])
    twohot = jnp.where(hit, 1.0, 0.0).astype(jnp.float32)

    g = jnp.dot(p_ref[...], twohot, preferred_element_type=jnp.float32)  # [H, TE]
    h1 = jnp.maximum(g, 0.0)                                             # relu
    s = jnp.sum(h1 * w2_ref[...], axis=0, keepdims=True) + b2_ref[...]   # [1, TE]
    o_ref[...] = s.astype(o_ref.dtype)


def mlp_predictor_forward(src, dst, h, w1, b1, w2, b2, *, tile_e=512):
    """Compute per-edge scores.

    src, dst : int32 [E]    edge endpoints
    h        : f32   [N, H] node features
    w1, b1   : f32   [H, 2H], [H]   (PyTorch nn.Linear: weight [out, in])
    w2, b2   : f32   [1, H], [1]
    returns  : f32   [E]    edge scores
    """
    N, H = h.shape
    E = src.shape[0]

    # ---- Stage 1: fused per-node projection table (computed once, tiny) ----
    w1a = w1[:, :H]            # [H, H]
    w1b = w1[:, H:]            # [H, H]
    ht = h.T                   # [H, N]
    b1_c = b1.reshape(H, 1)

    p = pl.pallas_call(
        _node_proj_kernel,
        out_shape=jax.ShapeDtypeStruct((H, 2 * N), jnp.float32),
        grid_spec=pltpu.PrefetchScalarGridSpec(
            num_scalar_prefetch=0,
            grid=(1,),
            in_specs=[
                pl.BlockSpec((H, H), lambda i: (0, 0)),
                pl.BlockSpec((H, H), lambda i: (0, 0)),
                pl.BlockSpec((H, 1), lambda i: (0, 0)),
                pl.BlockSpec((H, N), lambda i: (0, 0)),
            ],
            out_specs=pl.BlockSpec((H, 2 * N), lambda i: (0, 0))),
        compiler_params=pltpu.CompilerParams(
            dimension_semantics=("arbitrary",)),
    )(w1a, w1b, b1_c, ht)

    # ---- Stage 2: per-edge scoring -----------------------------------------
    e_pad = pl.cdiv(E, tile_e) * tile_e
    src_p = jnp.pad(src.astype(jnp.int32), (0, e_pad - E)).reshape(1, e_pad)
    dst_p = jnp.pad(dst.astype(jnp.int32) + N, (0, e_pad - E)).reshape(1, e_pad)

    w2_c = w2.reshape(H, 1)    # second-layer weights as a column
    b2_c = b2.reshape(1, 1)

    n_tiles = e_pad // tile_e
    cost = pl.CostEstimate(
        flops=int(e_pad) * (4 * N * H + 3 * H),          # two-hot gather + layer 2
        transcendentals=0,
        bytes_accessed=int(e_pad) * 12 + 2 * H * N * 4 + (H + 1) * 4,
    )

    out = pl.pallas_call(
        _edge_score_kernel,
        out_shape=jax.ShapeDtypeStruct((1, e_pad), jnp.float32),
        grid_spec=pltpu.PrefetchScalarGridSpec(
            num_scalar_prefetch=0,
            grid=(n_tiles,),
            in_specs=[
                pl.BlockSpec((1, tile_e), lambda i: (0, i)),     # src tile
                pl.BlockSpec((1, tile_e), lambda i: (0, i)),     # (dst + N) tile
                pl.BlockSpec((H, 2 * N), lambda i: (0, 0)),      # P (VMEM-resident)
                pl.BlockSpec((H, 1), lambda i: (0, 0)),          # W2 row as column
                pl.BlockSpec((1, 1), lambda i: (0, 0)),          # b2
            ],
            out_specs=pl.BlockSpec((1, tile_e), lambda i: (0, i)),
        ),
        compiler_params=pltpu.CompilerParams(
            dimension_semantics=("parallel",),
            vmem_limit_bytes=32 * 1024 * 1024),
        cost_estimate=cost,
    )(src_p, dst_p, p, w2_c, b2_c)

    return out[0, :E]


if __name__ == "__main__":
    key = jax.random.PRNGKey(0)
    k_h, k_w1, k_b1, k_w2, k_b2, k_src, k_dst = jax.random.split(key, 7)

    H_FEATS = 32     # h_feats
    N_NODES = 16
    N_EDGES = 64

    # Node features and a synthetic edge list (deterministic).
    h = jax.random.normal(k_h, (N_NODES, H_FEATS), dtype=jnp.float32)
    src = jax.random.randint(k_src, (N_EDGES,), 0, N_NODES, dtype=jnp.int32)
    dst = jax.random.randint(k_dst, (N_EDGES,), 0, N_NODES, dtype=jnp.int32)

    # Deterministic parameter init (PyTorch Linear shapes: weight [out, in]).
    w1 = jax.random.normal(k_w1, (H_FEATS, 2 * H_FEATS), dtype=jnp.float32) * 0.1
    b1 = jax.random.normal(k_b1, (H_FEATS,), dtype=jnp.float32) * 0.1
    w2 = jax.random.normal(k_w2, (1, H_FEATS), dtype=jnp.float32) * 0.1
    b2 = jax.random.normal(k_b2, (1,), dtype=jnp.float32) * 0.1

    scores = mlp_predictor_forward(src, dst, h, w1, b1, w2, b2)
    scores = jax.block_until_ready(scores)

    # Pure-JAX reference of the original (gather + concat + MLP) forward.
    x_ref = jnp.concatenate([h[src], h[dst]], axis=1)
    ref = (jnp.maximum(x_ref @ w1.T + b1, 0.0) @ w2.T + b2)[:, 0]
    assert scores.shape == (N_EDGES,)
    assert jnp.allclose(scores, ref, atol=1e-5, rtol=1e-5)

    print("KERNEL_OK")
</pallas_src>

<mosaic_0001>
module attributes {stable_mosaic.version = 11 : i64} {
  func.func @_node_proj_kernel(%arg0: i32, %arg1: memref<32x32xf32, #tpu.memory_space<vmem>>, %arg2: memref<32x32xf32, #tpu.memory_space<vmem>>, %arg3: memref<32x1xf32, #tpu.memory_space<vmem>>, %arg4: memref<32x16xf32, #tpu.memory_space<vmem>>, %arg5: memref<32x32xf32, #tpu.memory_space<vmem>>) attributes {dimension_semantics = [#tpu.dimension_semantics<arbitrary>], iteration_bounds = array<i64: 1>, scalar_prefetch = 0 : i64, scratch_operands = 0 : i64, tpu.core_type = #tpu.core_type<tc>, window_params = [{pipeline_mode = #tpu.pipeline_mode<synchronous>, transform_indices = @transform_0, window_bounds = array<i64: 32, 32>}, {pipeline_mode = #tpu.pipeline_mode<synchronous>, transform_indices = @transform_1, window_bounds = array<i64: 32, 32>}, {pipeline_mode = #tpu.pipeline_mode<synchronous>, transform_indices = @transform_2, window_bounds = array<i64: 32, 1>}, {pipeline_mode = #tpu.pipeline_mode<synchronous>, transform_indices = @transform_3, window_bounds = array<i64: 32, 16>}, {pipeline_mode = #tpu.pipeline_mode<synchronous>, transform_indices = @transform_4, window_bounds = array<i64: 32, 32>}]} {
    %c0 = arith.constant 0 : index
    %c0_0 = arith.constant 0 : index
    %0 = vector.load %arg4[%c0, %c0_0] : memref<32x16xf32, #tpu.memory_space<vmem>>, vector<32x16xf32>
    %c0_1 = arith.constant 0 : index
    %c0_2 = arith.constant 0 : index
    %1 = vector.load %arg1[%c0_1, %c0_2] : memref<32x32xf32, #tpu.memory_space<vmem>>, vector<32x32xf32>
    %cst = arith.constant dense<0.000000e+00> : vector<32x16xf32>
    %2 = tpu.matmul %1, %0, %cst {dimension_numbers = #tpu.dot_dimension_numbers<[1], [0], [0], [1], [0, 0, 1, 1], [], []>} : vector<32x32xf32>, vector<32x16xf32>, vector<32x16xf32> -> vector<32x16xf32>
    %c0_3 = arith.constant 0 : index
    %c0_4 = arith.constant 0 : index
    %3 = vector.load %arg3[%c0_3, %c0_4] : memref<32x1xf32, #tpu.memory_space<vmem>>, vector<32x1xf32>
    %4 = vector.broadcast %3 : vector<32x1xf32> to vector<32x16xf32>
    %5 = arith.addf %2, %4 : vector<32x16xf32>
    %c0_5 = arith.constant 0 : index
    %c0_6 = arith.constant 0 : index
    %6 = vector.load %arg2[%c0_5, %c0_6] : memref<32x32xf32, #tpu.memory_space<vmem>>, vector<32x32xf32>
    %cst_7 = arith.constant dense<0.000000e+00> : vector<32x16xf32>
    %7 = tpu.matmul %6, %0, %cst_7 {dimension_numbers = #tpu.dot_dimension_numbers<[1], [0], [0], [1], [0, 0, 1, 1], [], []>} : vector<32x32xf32>, vector<32x16xf32>, vector<32x16xf32> -> vector<32x16xf32>
    %8 = tpu.concatenate %5, %7 in 1 : vector<32x16xf32>, vector<32x16xf32> -> vector<32x32xf32>
    %c0_8 = arith.constant 0 : index
    %c0_9 = arith.constant 0 : index
    %9 = vector.load %arg5[%c0_8, %c0_9] : memref<32x32xf32, #tpu.memory_space<vmem>>, vector<32x32xf32>
    tpu.vector_store %arg5[%c0_8, %c0_9], %8 {strides = array<i32>} : memref<32x32xf32, #tpu.memory_space<vmem>>, vector<32x32xf32>,
    return
  }
  func.func @transform_0(%arg0: i32) -> (i32, i32) {
    %c0_i32 = arith.constant 0 : i32
    %c0_i32_0 = arith.constant 0 : i32
    %c0_i32_1 = arith.constant 0 : i32
    return %c0_i32, %c0_i32_0 : i32, i32
  }
  func.func @transform_1(%arg0: i32) -> (i32, i32) {
    %c0_i32 = arith.constant 0 : i32
    %c0_i32_0 = arith.constant 0 : i32
    %c0_i32_1 = arith.constant 0 : i32
    return %c0_i32, %c0_i32_0 : i32, i32
  }
  func.func @transform_2(%arg0: i32) -> (i32, i32) {
    %c0_i32 = arith.constant 0 : i32
    %c0_i32_0 = arith.constant 0 : i32
    %c0_i32_1 = arith.constant 0 : i32
    return %c0_i32, %c0_i32_0 : i32, i32
  }
  func.func @transform_3(%arg0: i32) -> (i32, i32) {
    %c0_i32 = arith.constant 0 : i32
    %c0_i32_0 = arith.constant 0 : i32
    %c0_i32_1 = arith.constant 0 : i32
    return %c0_i32, %c0_i32_0 : i32, i32
  }
  func.func @transform_4(%arg0: i32) -> (i32, i32) {
    %c0_i32 = arith.constant 0 : i32
    %c0_i32_0 = arith.constant 0 : i32
    %c0_i32_1 = arith.constant 0 : i32
    return %c0_i32, %c0_i32_0 : i32, i32
  }
}

</mosaic_0001>

<bundles_post_ra>
// kernel: tpu_custom_call.1
= control target key start
LH: loop header
LB: loop body
LE: loop exit
PB: predicated region body
PF: predicated region fallthrough
CT: control target
= control target key end

     0   :  { %vm50_vm0 = vcmask 261120   ;;  %v389_v6 = vmov 0   ;;  %s495_s0 = inlined_call_operand.vmem [shape: f32[32,32], index: 0, kind: input, shape index: {}]   ;;  %s496_s1 = inlined_call_operand.vmem [shape: f32[32,32], index: 1, kind: input, shape index: {}]   ;;  %s497_s2 = inlined_call_operand.vmem [shape: f32[32,1], index: 2, kind: input, shape index: {}]   ;;  %s498_s3 = inlined_call_operand.vmem [shape: f32[32,16], index: 3, kind: input, shape index: {}]   ;;  %s499_s4 = inlined_call_operand.hbm [shape: f32[32,32], index: 4, kind: output, shape index: {}]  }
   0x1   :  { %v18_v0 = vld [vmem:[%s498_s3] sm:$0xff]  ;;  %v19_v1 = vld [vmem:[%s498_s3 + $0x8] sm:$0xff]  ;;  %v20_v2 = vld [vmem:[%s498_s3 + $0x10] sm:$0xff]  ;;  %364 = vset.pattern.permute.xlu1 %v389_v6  ;;  %363 = vset.pattern.permute.xlu0 %v389_v6 }
   0x2   :  { %v342_v3 = vpack.c.bf16 %v19_v1, %v18_v0  ;;  %v21_v4 = vld [vmem:[%s498_s3 + $0x18] sm:$0xff]  ;;  %v148_v5 = vld [vmem:[%s496_s1] sm:$0xff]  ;;  %v28_v9 = vld [vmem:[%s497_s2 + $0x10] sm:$0xff] }
   0x3   :  { %v346_v7 = vpack.c.bf16 %v21_v4, %v20_v2  ;;  %336 = vmatprep.mubr.msk.f32.mxu1 %vm50_vm0, %v148_v5  ;;  %v22_v8 = vld [vmem:[%s495_s0] sm:$0xff] }
   0x4   :  { %351 = vmatprep.subr.bf16.mxu1 %v342_v3  ;;  %343 = vmatprep.subr.bf16.mxu0 %v342_v3  ;;  %v26_v10 = vld [vmem:[%s497_s2] sm:$0xff] }
   0x5   :  { %353 = vmatpush3.bf16.msra.mxu1 %v342_v3  ;;  %345 = vmatpush3.bf16.msra.mxu0 %v342_v3 }
   0x6   :  { %355 = vmatprep.subr.bf16.mxu1 %v346_v7  ;;  %347 = vmatprep.subr.bf16.mxu0 %v346_v7 }
   0x7   :  { %9 = vsyncpa [#allocation3], 0  ;;  %322 = vmatprep.mubr.msk.f32.mxu0 %vm50_vm0, %v22_v8  ;;  %42 = vperm.xlu1 %364, %v28_v9   ;;  %v29_v11 = vld [vmem:[%s497_s2 + $0x18] sm:$0xff]  ;;  %v149_v12 = vld [vmem:[%s496_s1 + $0x8] sm:$0xff]  ;;  %vm265_vm1 = vcmask 130048  }
   0x8   :  { %32 = vperm.xlu0 %363, %v26_v10   ;;  %v23_v13 = vld [vmem:[%s495_s0 + $0x8] sm:$0xff]  ;;  %v150_v14 = vld [vmem:[%s496_s1 + $0x10] sm:$0xff]  ;;  %v151_v17 = vld [vmem:[%s496_s1 + $0x18] sm:$0xff] }
   0x9   :  { %357 = vmatpush3.bf16.msra.mxu1 %v346_v7  ;;  %349 = vmatpush3.bf16.msra.mxu0 %v346_v7  ;;  %v24_v15 = vld [vmem:[%s495_s0 + $0x10] sm:$0xff]  ;;  %v27_v16 = vld [vmem:[%s497_s2 + $0x8] sm:$0xff]  ;;  %v25_v18 = vld [vmem:[%s495_s0 + $0x18] sm:$0xff]  ;;  %s390_s2 = smov 16   ;;  %s391_s0 = smov [#allocation2]  }
   0xa   :  { %s279_s1 = sshll.u32 %s391_s0, 4  ;;  %s280_s1 = int_to_ptr.vmem [resolvable:$true] %s279_s1 }
   0xb   :  { %47 = vperm.xlu1 %364, %v29_v11   ;;  %s365_s20 = scalar_lea.vmem %s280_s1, 512  ;;  %p370_p1 = scmp.lt.s32.totalorder %s280_s1, %s280_s1 }
   0xc   :  { %337 = vmatmul.mubr.msk.f32.vlgmr.msra.gmra.mrb[0].mxu1 %vm50_vm0, %v149_v12  ;;  %323 = vmatmul.mubr.msk.f32.vlgmr.msra.gmra.mrb[0].mxu0 %vm50_vm0, %v23_v13  ;;  %p366_p0 = scmp.ne.s32.totalorder %s280_s1, %s365_s20  ;;  %p371_p2 = scmp.lt.s32.totalorder %s365_s20, %s365_s20 }
   0xd   :  { %339 = vmatprep.mubr.msk.f32.mxu1 %vm50_vm0, %v150_v14  ;;  %325 = vmatprep.mubr.msk.f32.mxu0 %vm50_vm0, %v24_v15 }
   0xe   :  { %37 = vperm.xlu0 %363, %v27_v16   ;;  %p372_p3 = por %p371_p2, %p370_p1 }
  0x10   :  { %340 = vmatmul.mubr.msk.f32.gmra.mrb[2].mxu1 %vm50_vm0, %v151_v17  ;;  %326 = vmatmul.mubr.msk.f32.gmra.mrb[2].mxu0 %vm50_vm0, %v25_v18  ;;  %p373_p4 = pnand %p372_p3, %p366_p0 }
  0x86   :  { %v43_v27 = vpop.permute.xlu1 %42 }
  0x87   :  { %v33_v28 = vpop.permute.xlu0 %32 }
  0x8a   :  { %v48_v29 = vpop.permute.xlu1 %47 }
  0x8d   :  { %v38_v30 = vpop.permute.xlu0 %37 }
  0xdf   :  { %v338_v19 = vpop.f32.mrb[0].mxu1  ;;  %v324_v20 = vpop.f32.mrb[0].mxu0 }
  0xe0   :  { %255 = vrot.lane.b32.xlu1 %v338_v19, %s390_s2  ;;  %v230_v21 = vpop.f32.mrb[1].mxu1  ;;  %v129_v22 = vpop.f32.mrb[1].mxu0  ;;  %v135_v31 = vadd.f32 %v324_v20, %v38_v30 }
  0xe1   :  { %253 = vrot.lane.b32.xlu0 %v230_v21, %s390_s2  ;;  %v130_v32 = vadd.f32 %v129_v22, %v33_v28 }
  0xe3   :  { %v341_v23 = vpop.f32.mrb[2].mxu1  ;;  %v327_v24 = vpop.f32.mrb[2].mxu0 }
  0xe4   :  { %259 = vrot.lane.b32.xlu1 %v341_v23, %s390_s2  ;;  %v240_v25 = vpop.f32.mrb[3].mxu1  ;;  %v139_v26 = vpop.f32.mrb[3].mxu0  ;;  %v145_v37 = vadd.f32 %v327_v24, %v48_v29 }
  0xe5   :  { %257 = vrot.lane.b32.xlu0 %v240_v25, %s390_s2  ;;  %v140_v38 = vadd.f32 %v139_v26, %v43_v27 }
 0x152   :  { %v256_v33 = vpop.permute.xlu1 %255 }
 0x153   :  { %v267_v34 = vsel %vm265_vm1, %v135_v31, %v256_v33  ;;  %v254_v35 = vpop.permute.xlu0 %253 }
 0x154   :  { %271 = vst.msk [vmem:[#allocation2 + $0x8] sm:$0xff] %vm50_vm0, %v267_v34  ;;  %v266_v36 = vsel %vm265_vm1, %v130_v32, %v254_v35 }
 0x155   :  { %270 = vst.msk [vmem:[#allocation2] sm:$0xff] %vm50_vm0, %v266_v36 }
 0x156   :  { %v260_v39 = vpop.permute.xlu1 %259 }
 0x157   :  { %v269_v40 = vsel %vm265_vm1, %v145_v37, %v260_v39  ;;  %v258_v41 = vpop.permute.xlu0 %257 }
 0x158   :  { %273 = vst.msk [vmem:[#allocation2 + $0x18] sm:$0xff] %vm50_vm0, %v269_v40  ;;  %v268_v42 = vsel %vm265_vm1, %v140_v38, %v258_v41 }
 0x159   :  { %272 = vst.msk [vmem:[#allocation2 + $0x10] sm:$0xff] %vm50_vm0, %v268_v42 }
 0x15a   :  { %376 = shalt.err (!%p373_p4)
}
 0x15b   :  { %s377_s23 = scalar_lea.hbm %s499_s4, 512 }
 0x15c   :  { %p378_p5 = scmp.ne.s32.totalorder %s499_s4, %s377_s23  ;;  %p381_p6 = scmp.lt.u32.totalorder %s377_s23, %s499_s4 }
 0x15e   :  { %p383_p7 = pnand %p381_p6, %p378_p5 }
 0x160   :  { %386 = shalt.err (!%p383_p7)
}
 0x161   :  { %s392_s3 = smov 128   ;;  %s393_s28 = smov 8  }
 0x162   :  { %285 = dma.vmem_to_hbm [thread:$0]  %s280_s1, 512, %s499_s4, [#allocation3], %s392_s3, %s392_s3, %s393_s28  }
 0x163   :  { %387 = dma.done.wait [#allocation3], 512  }
 0x164   :  { %388 = vsyncadd [#allocation3], 4294966784 }
 0x165   :  { %289 = vsyncpa [#allocation3], 1 }

</bundles_post_ra>
